<compile_context>
chip_gen: v7x
topology: tpu7x:2x2x1
jax: 0.10.0
libtpu: 0.0.40
codegen_flags: <defaults>
</compile_context>

<pallas_src>
import functools

import jax
import jax.numpy as jnp
from jax.experimental import pallas as pl
from jax.experimental.pallas import tpu as pltpu


def _round_up(a: int, b: int) -> int:
    return ((a + b - 1) // b) * b


def _row_tile(n_rows: int, lane_w: int) -> int:
    """Rows per grid step.

    ~1 MiB of f32-equivalent data per block (HBM roofline plateaus around
    512 KiB - 1 MiB), sized against f32 so in-kernel f32 temporaries stay small
    even for bf16 I/O (v7x only has 64 MiB VMEM).  Capped so there are >= 8
    grid steps whenever the row count allows.
    """
    tm = max(8, ((1 << 20) // (lane_w * 4)) // 8 * 8)
    tm = min(tm, max(8, _round_up(pl.cdiv(n_rows, 8), 8)))
    return min(tm, 4096)


def _vmem_limit_bytes(tm: int, lane_w: int, itemsize: int) -> int:
    io_block = tm * lane_w * itemsize
    f32_block = tm * lane_w * 4
    est = 4 * io_block + 10 * f32_block + lane_w * lane_w * 2 + (1 << 20)
    # 32 MiB floor (default scoped limit everywhere), 40 MiB cap keeps well
    # inside v7x's 64 MiB physical VMEM.
    return int(min(40 << 20, max(32 << 20, est)))


def _layernorm_packed_kernel(x_ref, w_ref, b_ref, p_ref, o_ref, *, eps: float, hi_lo: bool):
    # x_ref: (tm, Cp) with Cp = g*C -- g original rows packed per 128-lane row.
    # w_ref/b_ref: (1, Cp) f32 weight/bias tiled g times along lanes.
    # p_ref: (Cp, Cp) bf16 block-diagonal averaging matrix, P[l, m] = 1/C if
    #        l // C == m // C else 0 (packed segments never mix).
    x = x_ref[...]
    xf = x.astype(jnp.float32)
    p = p_ref[...]

    if hi_lo:
        # f32/f16 input: bf16 hi/lo split keeps the mean accurate to ~2^-17
        # while every MXU pass stays a single bf16 x bf16 matmul.
        x_hi = xf.astype(jnp.bfloat16)
        x_lo = (xf - x_hi.astype(jnp.float32)).astype(jnp.bfloat16)
        mu = (jnp.dot(x_hi, p, preferred_element_type=jnp.float32)
              + jnp.dot(x_lo, p, preferred_element_type=jnp.float32))
    else:
        # bf16 input is already bf16-exact: one MXU pass.
        mu = jnp.dot(x, p, preferred_element_type=jnp.float32)

    xc = xf - mu
    v = xc * xc
    v_hi = v.astype(jnp.bfloat16)
    var = jnp.dot(v_hi, p, preferred_element_type=jnp.float32)
    if hi_lo:
        v_lo = (v - v_hi.astype(jnp.float32)).astype(jnp.bfloat16)
        var = var + jnp.dot(v_lo, p, preferred_element_type=jnp.float32)

    # rsqrt goes to the EUP (free slot); fuse the affine chain.
    y = xc * (jax.lax.rsqrt(var + eps) * w_ref[...]) + b_ref[...]
    o_ref[...] = y.astype(o_ref.dtype)


def _layernorm_rows_kernel(x_ref, w_ref, b_ref, o_ref, *, eps: float, inv_c: float):
    # Fallback (C >= 128 or C does not divide 128): one row per sublane row.
    # TODO(synk): if profiling shows the XLU binding for very large C on
    # v6e/v7x, route the mean/var reductions through an MXU dot instead.
    x = x_ref[...].astype(jnp.float32)
    mu = jnp.sum(x, axis=-1, keepdims=True) * inv_c
    xc = x - mu
    var = jnp.sum(xc * xc, axis=-1, keepdims=True) * inv_c
    y = xc * (jax.lax.rsqrt(var + eps) * w_ref[...]) + b_ref[...]
    o_ref[...] = y.astype(o_ref.dtype)


def _packed_layernorm(x2, w32, b32, g, eps):
    M, C = x2.shape
    Cp = g * C                      # == 128
    Mp = M // g
    dtype = x2.dtype
    itemsize = jnp.dtype(dtype).itemsize
    xp = x2.reshape(Mp, Cp)         # contiguous row-major -> free reshape

    tm = _row_tile(Mp, Cp)
    grid = (pl.cdiv(Mp, tm),)

    w_p = jnp.tile(w32, (1, g))
    b_p = jnp.tile(b32, (1, g))
    seg = jnp.arange(Cp, dtype=jnp.int32) // C
    # 0 and 1/C (C a power of two) are bf16-exact -> bf16 MXU operand loses nothing.
    p_mat = jnp.where(seg[:, None] == seg[None, :], 1.0 / C, 0.0).astype(jnp.bfloat16)

    hi_lo = jnp.dtype(dtype) != jnp.dtype(jnp.bfloat16)
    kernel = functools.partial(_layernorm_packed_kernel, eps=float(eps), hi_lo=bool(hi_lo))

    out_p = pl.pallas_call(
        kernel,
        out_shape=jax.ShapeDtypeStruct((Mp, Cp), dtype),
        grid=grid,
        in_specs=[
            pl.BlockSpec((tm, Cp), lambda i: (i, 0)),
            # Constant-index operands: DMA'd once, stay VMEM-resident.
            pl.BlockSpec((1, Cp), lambda i: (0, 0)),
            pl.BlockSpec((1, Cp), lambda i: (0, 0)),
            pl.BlockSpec((Cp, Cp), lambda i: (0, 0)),
        ],
        out_specs=pl.BlockSpec((tm, Cp), lambda i: (i, 0)),
        compiler_params=pltpu.CompilerParams(
            dimension_semantics=("parallel",),
            vmem_limit_bytes=_vmem_limit_bytes(tm, Cp, itemsize),
        ),
    )(xp, w_p, b_p, p_mat)
    return out_p.reshape(M, C)


def _rows_layernorm(x2, w32, b32, eps):
    M, C = x2.shape
    dtype = x2.dtype
    itemsize = jnp.dtype(dtype).itemsize
    tm = _row_tile(M, C)
    grid = (pl.cdiv(M, tm),)
    kernel = functools.partial(_layernorm_rows_kernel, eps=float(eps), inv_c=1.0 / C)
    return pl.pallas_call(
        kernel,
        out_shape=jax.ShapeDtypeStruct((M, C), dtype),
        grid=grid,
        in_specs=[
            pl.BlockSpec((tm, C), lambda i: (i, 0)),
            pl.BlockSpec((1, C), lambda i: (0, 0)),
            pl.BlockSpec((1, C), lambda i: (0, 0)),
        ],
        out_specs=pl.BlockSpec((tm, C), lambda i: (i, 0)),
        compiler_params=pltpu.CompilerParams(
            dimension_semantics=("parallel",),
            vmem_limit_bytes=_vmem_limit_bytes(tm, C, itemsize),
        ),
    )(x2, w32, b32)


def _jnp_layernorm(x2, w32, b32, eps):
    # Plain-JAX path for the tiny (< g rows) ragged tail only.
    xf = x2.astype(jnp.float32)
    mu = jnp.mean(xf, axis=-1, keepdims=True)
    var = jnp.mean((xf - mu) ** 2, axis=-1, keepdims=True)
    y = (xf - mu) * jax.lax.rsqrt(var + eps) * w32 + b32
    return y.astype(x2.dtype)


def withbias_layernorm(x, weight, bias, *, eps: float = 1e-5):
    """LayerNorm over the last axis: (x - mu) / sqrt(var_biased + eps) * weight + bias."""
    orig_shape = x.shape
    C = int(orig_shape[-1])
    x2 = x.reshape(-1, C)
    M = x2.shape[0]
    w32 = weight.reshape(1, C).astype(jnp.float32)
    b32 = bias.reshape(1, C).astype(jnp.float32)

    # Lane-packing factor: g rows per 128-lane row (only when C divides 128,
    # which also makes 1/C bf16-exact).
    g = 128 // C if (C < 128 and 128 % C == 0) else 1
    Mg = (M // g) * g

    if g > 1 and Mg > 0:
        x_main = x2 if Mg == M else x2[:Mg]
        out_main = _packed_layernorm(x_main, w32, b32, g, eps)
        if Mg == M:
            out2 = out_main
        else:
            # Ragged tail (< g rows): handled separately instead of padding /
            # slicing the whole tensor (would cost extra full HBM passes).
            out2 = jnp.concatenate([out_main, _jnp_layernorm(x2[Mg:], w32, b32, eps)], axis=0)
    else:
        out2 = _rows_layernorm(x2, w32, b32, eps)
    return out2.reshape(orig_shape)


def _reference_layernorm(x, weight, bias, eps=1e-5):
    x32 = x.astype(jnp.float32)
    mu = jnp.mean(x32, axis=-1, keepdims=True)
    sigma = jnp.mean((x32 - mu) ** 2, axis=-1, keepdims=True)
    y = (x32 - mu) / jnp.sqrt(sigma + eps) * weight.astype(jnp.float32) + bias.astype(jnp.float32)
    return y.astype(x.dtype)


if __name__ == "__main__":
    key = jax.random.PRNGKey(0)
    kx, kw, kb = jax.random.split(key, 3)

    # Small shapes consistent with the module: tokens (B, H*W, C), C = normalized_shape.
    B, H, W, C = 2, 8, 8, 32
    x = jax.random.normal(kx, (B, H * W, C), dtype=jnp.float32)
    weight = jnp.ones((C,), jnp.float32) + 0.1 * jax.random.normal(kw, (C,), jnp.float32)
    bias = 0.1 * jax.random.normal(kb, (C,), jnp.float32)

    # 1) f32, lane-packed path (g = 4, hi/lo-split MXU reductions).
    out = jax.block_until_ready(withbias_layernorm(x, weight, bias))
    ref = _reference_layernorm(x, weight, bias)
    assert out.shape == x.shape
    err = float(jnp.max(jnp.abs(out - ref)))
    assert jnp.allclose(out, ref, atol=1e-4, rtol=1e-4), f"f32 packed mismatch (max abs err {err})"

    # 2) bf16 input: packed path without the hi/lo split (fewer MXU/VPU ops).
    xb = x.astype(jnp.bfloat16)
    out_b = jax.block_until_ready(withbias_layernorm(xb, weight, bias))
    ref_b = _reference_layernorm(xb, weight, bias).astype(jnp.float32)
    assert out_b.dtype == xb.dtype and out_b.shape == xb.shape
    assert jnp.allclose(out_b.astype(jnp.float32), ref_b, atol=8e-2, rtol=8e-2), "bf16 packed mismatch"

    # 3) Ragged token count (M % g != 0): tail handled outside the packed kernel.
    xr = x.reshape(-1, C)[:63].reshape(1, 63, C)
    out_r = jax.block_until_ready(withbias_layernorm(xr, weight, bias))
    ref_r = _reference_layernorm(xr, weight, bias)
    assert out_r.shape == xr.shape
    assert jnp.allclose(out_r, ref_r, atol=1e-4, rtol=1e-4), "ragged-tail mismatch"

    # 4) C that does not pack into 128 lanes -> per-row fallback kernel.
    C2 = 192
    x_big = jax.random.normal(kx, (2, 16, C2), dtype=jnp.float32)
    w_big = jnp.ones((C2,), jnp.float32)
    b_big = jnp.zeros((C2,), jnp.float32)
    out_big = jax.block_until_ready(withbias_layernorm(x_big, w_big, b_big))
    ref_big = _reference_layernorm(x_big, w_big, b_big)
    assert jnp.allclose(out_big, ref_big, atol=1e-4, rtol=1e-4), "rows-path mismatch"

    print("KERNEL_OK")
</pallas_src>

<mosaic_0001>
module attributes {stable_mosaic.version = 11 : i64} {
  func.func @_layernorm_packed_kernel(%arg0: i32, %arg1: memref<8x128xf32, #tpu.memory_space<vmem>>, %arg2: memref<1x128xf32, #tpu.memory_space<vmem>>, %arg3: memref<1x128xf32, #tpu.memory_space<vmem>>, %arg4: memref<128x128xbf16, #tpu.memory_space<vmem>>, %arg5: memref<8x128xf32, #tpu.memory_space<vmem>>) attributes {dimension_semantics = [#tpu.dimension_semantics<parallel>], iteration_bounds = array<i64: 4>, scalar_prefetch = 0 : i64, scratch_operands = 0 : i64, tpu.core_type = #tpu.core_type<tc>, window_params = [{transform_indices = @transform_0, window_bounds = array<i64: 8, 128>}, {pipeline_mode = #tpu.pipeline_mode<synchronous>, transform_indices = @transform_1, window_bounds = array<i64: 1, 128>}, {pipeline_mode = #tpu.pipeline_mode<synchronous>, transform_indices = @transform_2, window_bounds = array<i64: 1, 128>}, {pipeline_mode = #tpu.pipeline_mode<synchronous>, transform_indices = @transform_3, window_bounds = array<i64: 128, 128>}, {transform_indices = @transform_4, window_bounds = array<i64: 8, 128>}]} {
    %c0 = arith.constant 0 : index
    %c0_0 = arith.constant 0 : index
    %0 = vector.load %arg1[%c0, %c0_0] : memref<8x128xf32, #tpu.memory_space<vmem>>, vector<8x128xf32>
    %c0_1 = arith.constant 0 : index
    %c0_2 = arith.constant 0 : index
    %1 = vector.load %arg4[%c0_1, %c0_2] : memref<128x128xbf16, #tpu.memory_space<vmem>>, vector<128x128xbf16>
    %2 = arith.truncf %0 : vector<8x128xf32> to vector<8x128xbf16>
    %3 = arith.extf %2 : vector<8x128xbf16> to vector<8x128xf32>
    %4 = arith.subf %0, %3 : vector<8x128xf32>
    %5 = arith.truncf %4 : vector<8x128xf32> to vector<8x128xbf16>
    %cst = arith.constant dense<0.000000e+00> : vector<8x128xf32>
    %6 = tpu.matmul %2, %1, %cst {dimension_numbers = #tpu.dot_dimension_numbers<[1], [0], [0], [1], [0, 0, 1, 1], [], []>} : vector<8x128xbf16>, vector<128x128xbf16>, vector<8x128xf32> -> vector<8x128xf32>
    %cst_3 = arith.constant dense<0.000000e+00> : vector<8x128xf32>
    %7 = tpu.matmul %5, %1, %cst_3 {dimension_numbers = #tpu.dot_dimension_numbers<[1], [0], [0], [1], [0, 0, 1, 1], [], []>} : vector<8x128xbf16>, vector<128x128xbf16>, vector<8x128xf32> -> vector<8x128xf32>
    %8 = arith.addf %6, %7 : vector<8x128xf32>
    %9 = arith.subf %0, %8 : vector<8x128xf32>
    %10 = arith.mulf %9, %9 : vector<8x128xf32>
    %11 = arith.truncf %10 : vector<8x128xf32> to vector<8x128xbf16>
    %cst_4 = arith.constant dense<0.000000e+00> : vector<8x128xf32>
    %12 = tpu.matmul %11, %1, %cst_4 {dimension_numbers = #tpu.dot_dimension_numbers<[1], [0], [0], [1], [0, 0, 1, 1], [], []>} : vector<8x128xbf16>, vector<128x128xbf16>, vector<8x128xf32> -> vector<8x128xf32>
    %13 = arith.extf %11 : vector<8x128xbf16> to vector<8x128xf32>
    %14 = arith.subf %10, %13 : vector<8x128xf32>
    %15 = arith.truncf %14 : vector<8x128xf32> to vector<8x128xbf16>
    %cst_5 = arith.constant dense<0.000000e+00> : vector<8x128xf32>
    %16 = tpu.matmul %15, %1, %cst_5 {dimension_numbers = #tpu.dot_dimension_numbers<[1], [0], [0], [1], [0, 0, 1, 1], [], []>} : vector<8x128xbf16>, vector<128x128xbf16>, vector<8x128xf32> -> vector<8x128xf32>
    %17 = arith.addf %12, %16 : vector<8x128xf32>
    %cst_6 = arith.constant 9.99999974E-6 : f32
    %18 = vector.broadcast %cst_6 : f32 to vector<8x128xf32>
    %19 = arith.addf %17, %18 : vector<8x128xf32>
    %20 = math.rsqrt %19 : vector<8x128xf32>
    %c0_7 = arith.constant 0 : index
    %c0_8 = arith.constant 0 : index
    %21 = vector.load %arg2[%c0_7, %c0_8] : memref<1x128xf32, #tpu.memory_space<vmem>>, vector<1x128xf32>
    %22 = vector.broadcast %21 : vector<1x128xf32> to vector<8x128xf32>
    %23 = arith.mulf %20, %22 : vector<8x128xf32>
    %24 = arith.mulf %9, %23 : vector<8x128xf32>
    %c0_9 = arith.constant 0 : index
    %c0_10 = arith.constant 0 : index
    %25 = vector.load %arg3[%c0_9, %c0_10] : memref<1x128xf32, #tpu.memory_space<vmem>>, vector<1x128xf32>
    %26 = vector.broadcast %25 : vector<1x128xf32> to vector<8x128xf32>
    %27 = arith.addf %24, %26 : vector<8x128xf32>
    %c0_11 = arith.constant 0 : index
    %c0_12 = arith.constant 0 : index
    %28 = vector.load %arg5[%c0_11, %c0_12] : memref<8x128xf32, #tpu.memory_space<vmem>>, vector<8x128xf32>
    tpu.vector_store %arg5[%c0_11, %c0_12], %27 {strides = array<i32>} : memref<8x128xf32, #tpu.memory_space<vmem>>, vector<8x128xf32>,
    return
  }
  func.func @transform_0(%arg0: i32) -> (i32, i32) {
    %c0_i32 = arith.constant 0 : i32
    %c0_i32_0 = arith.constant 0 : i32
    return %arg0, %c0_i32 : i32, i32
  }
  func.func @transform_1(%arg0: i32) -> (i32, i32) {
    %c0_i32 = arith.constant 0 : i32
    %c0_i32_0 = arith.constant 0 : i32
    %c0_i32_1 = arith.constant 0 : i32
    return %c0_i32, %c0_i32_0 : i32, i32
  }
  func.func @transform_2(%arg0: i32) -> (i32, i32) {
    %c0_i32 = arith.constant 0 : i32
    %c0_i32_0 = arith.constant 0 : i32
    %c0_i32_1 = arith.constant 0 : i32
    return %c0_i32, %c0_i32_0 : i32, i32
  }
  func.func @transform_3(%arg0: i32) -> (i32, i32) {
    %c0_i32 = arith.constant 0 : i32
    %c0_i32_0 = arith.constant 0 : i32
    %c0_i32_1 = arith.constant 0 : i32
    return %c0_i32, %c0_i32_0 : i32, i32
  }
  func.func @transform_4(%arg0: i32) -> (i32, i32) {
    %c0_i32 = arith.constant 0 : i32
    %c0_i32_0 = arith.constant 0 : i32
    return %arg0, %c0_i32 : i32, i32
  }
}

</mosaic_0001>

<bundles_post_ra>
// kernel: tpu_custom_call.1
= control target key start
LH: loop header
LB: loop body
LE: loop exit
PB: predicated region body
PF: predicated region fallthrough
CT: control target
= control target key end

     0   :  { %9 = vsyncpa [#allocation3], 0  ;;  %s1222_s0 = inlined_call_operand.hbm [shape: f32[32,128], index: 0, kind: input, shape index: {}]   ;;  %s1223_s1 = inlined_call_operand.vmem [shape: f32[1,128], index: 1, kind: input, shape index: {}]   ;;  %s1224_s2 = inlined_call_operand.vmem [shape: f32[1,128], index: 2, kind: input, shape index: {}]   ;;  %s1225_s3 = inlined_call_operand.hbm [shape: bf16[128,128], index: 3, kind: input, shape index: {}]   ;;  %s1226_s4 = inlined_call_operand.hbm [shape: f32[32,128], index: 4, kind: output, shape index: {}]  }
   0x1   :  { %11 = vsyncpa [#allocation3 + $0x1], 0 }
   0x2   :  { %12 = vsyncpa [#allocation6], 0 }
   0x3   :  { %13 = vsyncpa [#allocation4], 0 }
   0x4   :  { %15 = vsyncpa [#allocation4 + $0x1], 0  ;;  %s955_s15 = smov 0   ;;  %s957_s16 = smov 0  }
   0x5   :  { %s959_s17 = smov 0   ;;  %s961_s18 = smov 0  }
   0x6 LB: > { %s976_s19 = sadd.s32 4294967295, %s921_s18   ;;  %s578_s20 = sadd.s32 4294967294, %s921_s18   ;;  %s921_s18 = sphi %s961_s18, %s1245_s18   ;;  %s917_s17 = sphi %s959_s17, %s1244_s17   ;;  %s913_s16 = sphi %s957_s16, %s1243_s16   ;;  %s909_s15 = sphi %s955_s15, %s1242_s15  }
   0x7   : > { %p41_p0 = scmp.ne.s32.totalorder %s913_s16, %s909_s15  ;;  %p1227_p1 = scmp.eq.s32.totalorder %s976_s19, 0 }
   0x8   : > { %p134_p3 = scmp.eq.s32.totalorder %s578_s20, 3  ;;  %p579_p5 = scmp.ge.s32.totalorder %s921_s18, 1 }
   0x9   : > { %p985_p4 = por %p1227_p1, %p41_p0  ;;  %p141_p7 = scmp.lt.s32.totalorder %s921_s18, 5 }
   0xa   : > { %p990_p6 = por %p134_p3, %p41_p0  ;;  %s923_s24 = smov [#allocation5]  }
   0xb   : > { %s1230_s21 = scalar_select %p985_p4, 1, 0 }
   0xc   : > { %s1231_s22 = scalar_select %p990_p6, 1, 0 }
   0xd   : > { %p995_p8 = pnand %p579_p5, %p141_p7  ;;  %s159_s25 = sshll.u32 %s923_s24, 4  ;;  %s160_s25 = int_to_ptr.vmem [resolvable:$true] %s159_s25 }
   0xe   : > { %s1008_s27 = sadd.s32 1, %s921_s18   ;;  %s28_s28 = sadd.s32 1, %s917_s17 }
   0xf   : > { %s1232_s23 = scalar_select %p995_p8, 1, 0 }
  0x10   : > { %p730_p9 = pneg %p995_p8  ;;  %s25_s29 = ssub.s32 %s921_s18, %s1008_s27 }
  0x11   : > { %s793_s6 = scalar_lea.hbm %s1225_s3, 1024 }
  0x12   : > { %p1003_p10 = pnand %p730_p9, %p1227_p1  ;;  %p794_p11 = scmp.ne.s32.totalorder %s1225_s3, %s793_s6 }
  0x13   : > { %p800_p3 = scmp.lt.u32.totalorder %s793_s6, %s1225_s3 }
  0x14   : > { %p795_p12 = pneg %p1003_p10 }
  0x16   : > { %p796_p13 = pnand %p795_p12, %p794_p11 }
  0x18   : > { %p797_p0 = pneg %p796_p13 }
  0x1a   : > { %p802_p5 = pnand %p800_p3, %p797_p0 }
  0x1c   : > { %805 = shalt.err (!%p802_p5)
}
  0x1d   : > { %s806_s11 = scalar_lea.vmem %s160_s25, 1024  ;;  %p814_p2 = scmp.lt.s32.totalorder %s160_s25, %s160_s25 }
  0x1e   : > { %p807_p7 = scmp.ne.s32.totalorder %s160_s25, %s806_s11  ;;  %p815_p6 = scmp.lt.s32.totalorder %s806_s11, %s806_s11 }
  0x20   : > { %p809_p9 = pnand %p807_p7, %p795_p12  ;;  %p816_p4 = por %p815_p6, %p814_p2 }
  0x22   : > { %p810_p1 = pneg %p809_p9 }
  0x24   : > { %p817_p8 = pnand %p816_p4, %p810_p1 }
  0x26   : > { %820 = shalt.err (!%p817_p8)
}
  0x27   : > { %s924_s12 = smov 64   ;;  %s925_s13 = smov 4  }
  0x28   : > { %733 = dma.hbm_to_vmem [thread:$0]  (!%p1003_p10), %s1225_s3, 1024, %s160_s25, [#allocation6], %s924_s12, %s924_s12, %s925_s13  }
  0x29   : > { %p26_p11 = scmp.eq.s32.totalorder %s25_s29, 0  ;;  %p35_p2 = scmp.ne.s32.totalorder %s917_s17, %s913_s16 }
  0x2a   : > { %p36_p1 = scmp.eq.s32.totalorder %s921_s18, 0  ;;  %p743_p4 = scmp.lt.s32.totalorder %s921_s18, 4 }
  0x2b   : > { %s1034_s24 = scalar_select %p26_p11, %s917_s17, %s28_s28  }
  0x2c   : > { %p37_p6 = por %p36_p1, %p35_p2  ;;  %p1234_p8 = scmp.eq.s32.totalorder %s976_s19, 3 }
  0x2d   : > { %s173_s5 = sand.u32 1, %s917_s17   ;;  %s583_s6 = sshll.u32 %s921_s18, 7 }
  0x2e   : > { %p1038_p12 = por %p1234_p8, %p35_p2  ;;  %s582_s7 = sshll.u32 %s173_s5, 3 }
  0x2f   : > { %s1047_s9 = scalar_lea.hbm %s1222_s0, %s583_s6  ;;  %s177_s25 = scalar_lea.vmem [#allocation2], %s582_s7 }
  0x30   : > { %s184_s28 = sshll.u32 %s177_s25, 4  ;;  %p1049_p10 = pnand %p743_p4, %p37_p6  ;;  %s1053_s28 = int_to_ptr.vmem [resolvable:$true] %s184_s28 }
  0x31   : > { %s174_s10 = scalar_lea.sflag [#allocation3], %s173_s5  ;;  %s821_s11 = scalar_lea.hbm %s1047_s9, 128 }
  0x32   : > { %p822_p13 = scmp.ne.s32.totalorder %s1047_s9, %s821_s11  ;;  %p823_p0 = pneg %p1049_p10 }
  0x33   : > { %s826_s14 = scalar_lea.hbm %s1222_s0, 512  ;;  %p827_p7 = scmp.lt.u32.totalorder %s1047_s9, %s1222_s0 }
  0x34   : > { %p824_p3 = pnand %p823_p0, %p822_p13  ;;  %p828_p9 = scmp.lt.u32.totalorder %s826_s14, %s821_s11 }
  0x35   : > { %p830_p2 = scmp.lt.u32.totalorder %s821_s11, %s1047_s9 }
  0x36   : > { %p825_p5 = pneg %p824_p3  ;;  %p829_p11 = por %p828_p9, %p827_p7 }
  0x38   : > { %p831_p1 = por %p830_p2, %p829_p11 }
  0x3a   : > { %p832_p4 = pnand %p831_p1, %p825_p5 }
  0x3c   : > { %835 = shalt.err (!%p832_p4)
}
  0x3d   : > { %s836_s5 = scalar_lea.vmem %s1053_s28, 128  ;;  %s926_s7 = smov [#allocation2]  }
  0x3e   : > { %p837_p6 = scmp.ne.s32.totalorder %s1053_s28, %s836_s5  ;;  %s841_s26 = sshll.u32 %s926_s7, 4  ;;  %s842_s26 = int_to_ptr.vmem [resolvable:$false] %s841_s26 }
  0x3f   : > { %s843_s8 = scalar_lea.vmem %s842_s26, 256  ;;  %p844_p3 = scmp.lt.s32.totalorder %s1053_s28, %s842_s26 }
  0x40   : > { %p839_p8 = pnand %p837_p6, %p823_p0  ;;  %p845_p7 = scmp.lt.s32.totalorder %s843_s8, %s836_s5 }
  0x42   : > { %p840_p13 = pneg %p839_p8  ;;  %p846_p9 = por %p845_p7, %p844_p3 }
  0x44   : > { %p847_p11 = pnand %p846_p9, %p840_p13 }
  0x46   : > { %850 = shalt.err (!%p847_p11)
}
  0x47   : > { %737 = dma.hbm_to_vmem [thread:$0]  (!%p1049_p10), %s1047_s9, 128, %s1053_s28, %s174_s10  }
  0x48   : > { %p1237_p5 = scmp.ne.s32.totalorder %s1232_s23, 0 }
  0x49   : > { %s1083_s25 = sand.u32 (!%p1237_p5), 1, %s913_s16   ;;  %p1238_p0 = scmp.ne.s32.totalorder (!%p1237_p5), %s1230_s21, 0 }
  0x4a   : > { %193 = sbr.rel (%p1237_p5) target bundleno = 654 (0x28e), region = 36  ;;  %s585_s11 = sshll.u32 (!%p1237_p5), %s1083_s25, 3 }
  0x4b   : > { %s196_s12 = scalar_lea.sflag (!%p1237_p5), [#allocation3], %s1083_s25  ;;  %s199_s13 = scalar_lea.vmem (!%p1237_p5), [#allocation2], %s585_s11 }
  0x51   : > { %896 = dma.done.wait (%p1238_p0), %s196_s12, 128  }
  0x52   : > { %898 = vsyncadd (%p1238_p0), %s196_s12, 4294967168  ;;  %p1239_p10 = scmp.eq.s32.totalorder %s976_s19, 0 }
  0x54   : > { %900 = dma.done.wait (%p1239_p10), [#allocation6], 1024   ;;  %p1240_p2 = pmov %p1239_p10 }
  0x55   : > { %v927_v0 = vmov 0.0   ;;  %vm928_vm0 = vmmov 0   ;;  %v1103_v1 = vld [vmem:[#allocation5] sm:$0xff]   ;;  %v1106_v2 = vld [vmem:[#allocation5 + $0x8] sm:$0xff]   ;;  %v1112_v3 = vld [vmem:[#allocation5 + $0x10] sm:$0xff]   ;;  %s599_s29 = sshll.u32 %s976_s19, 7 }
  0x56   : > { %902 = vsyncadd (%p1240_p2), [#allocation6], 4294966272  ;;  %638 = vmatprep.subr.bf16.mxu0 %v927_v0  ;;  %654 = vmatprep.mubr.msk.bf16.mxu0 %vm928_vm0, %v927_v0  ;;  %v1118_v4 = vld [vmem:[#allocation5 + $0x18] sm:$0xff]   ;;  %v1124_v5 = vld [vmem:[#allocation5 + $0x20] sm:$0xff]   ;;  %s227_s10 = scalar_lea.vmem [#allocation7], %s585_s11  ;;  %s1179_s5 = scalar_lea.hbm %s1226_s4, %s599_s29 }
  0x57   : > { %678 = vmatprep.subr.bf16.mxu1 %v927_v0  ;;  %694 = vmatprep.mubr.msk.bf16.mxu1 %vm928_vm0, %v927_v0  ;;  %v229_v6 = vld [vmem:[%s199_s13] sm:$0xff]  ;;  %v788_v8 = vld [vmem:[#allocation5 + $0x28] sm:$0xff]   ;;  %s498_s14 = sshll.u32 %s227_s10, 4  ;;  %s485_s7 = scalar_lea.sflag [#allocation4], %s1083_s25  ;;  %s1181_s14 = int_to_ptr.vmem [resolvable:$true] %s498_s14 }
  0x58   : > { %639 = vmatpush3.bf16.msra.mxu0 %v1103_v1  ;;  %679 = vmatpush3.bf16.msra.mxu1 %v1103_v1  ;;  %v246_v7 = vpack.c.bf16 %v229_v6, %v229_v6  ;;  %v789_v10 = vld [vmem:[#allocation5 + $0x30] sm:$0xff]   ;;  %v790_v12 = vld [vmem:[#allocation5 + $0x38] sm:$0xff]   ;;  %s851_s26 = scalar_lea.vmem %s1181_s14, 128  ;;  %s929_s19 = smov [#allocation7]  }
  0x59   : > { %640 = vmatprep.subr.bf16.mxu0 %v927_v0  ;;  %680 = vmatprep.subr.bf16.mxu1 %v927_v0  ;;  %v596_v34 = vld [vmem:[%s1223_s1] ss:$0 sm:$0xff]  ;;  %p852_p1 = scmp.ne.s32.totalorder %s1181_s14, %s851_s26  ;;  %s855_s8 = sshll.u32 %s929_s19, 4  ;;  %s856_s8 = int_to_ptr.vmem [resolvable:$false] %s855_s8 }
  0x5a   : > { %v247_v9 = vunpack.c.l.bf16 %v246_v7  ;;  %v597_v37 = vld [vmem:[%s1224_s2] ss:$0 sm:$0xff]  ;;  %s857_s11 = scalar_lea.vmem %s856_s8, 256  ;;  %p858_p8 = scmp.lt.s32.totalorder %s1181_s14, %s856_s8 }
  0x5b   : > { %p853_p4 = pnand %p852_p1, %p1038_p12  ;;  %p859_p13 = scmp.lt.s32.totalorder %s857_s11, %s851_s26 }
  0x5c   : > { %641 = vmatpush3.bf16.msra.mxu0 %v1106_v2  ;;  %681 = vmatpush3.bf16.msra.mxu1 %v1106_v2  ;;  %v248_v11 = vsub.f32 %v229_v6, %v247_v9 }
  0x5d   : > { %642 = vmatprep.subr.bf16.mxu0 %v927_v0  ;;  %682 = vmatprep.subr.bf16.mxu1 %v927_v0  ;;  %p854_p6 = pneg %p853_p4  ;;  %p860_p3 = por %p859_p13, %p858_p8 }
  0x5e   : > { %v249_v13 = vpack.c.bf16 %v248_v11, %v248_v11 }
  0x5f   : > { %p861_p7 = pnand %p860_p3, %p854_p6 }
  0x60   : > { %643 = vmatpush3.bf16.msra.mxu0 %v1112_v3  ;;  %683 = vmatpush3.bf16.msra.mxu1 %v1112_v3 }
  0x61   : > { %644 = vmatprep.subr.bf16.mxu0 %v927_v0  ;;  %684 = vmatprep.subr.bf16.mxu1 %v927_v0 }
  0x64   : > { %645 = vmatpush3.bf16.msra.mxu0 %v1118_v4  ;;  %685 = vmatpush3.bf16.msra.mxu1 %v1118_v4 }
  0x65   : > { %646 = vmatprep.subr.bf16.mxu0 %v927_v0  ;;  %686 = vmatprep.subr.bf16.mxu1 %v927_v0 }
  0x68   : > { %647 = vmatpush3.bf16.msra.mxu0 %v1124_v5  ;;  %687 = vmatpush3.bf16.msra.mxu1 %v1124_v5 }
  0x69   : > { %648 = vmatprep.subr.bf16.mxu0 %v927_v0  ;;  %688 = vmatprep.subr.bf16.mxu1 %v927_v0 }
  0x6c   : > { %649 = vmatpush3.bf16.msra.mxu0 %v788_v8  ;;  %689 = vmatpush3.bf16.msra.mxu1 %v788_v8 }
  0x6d   : > { %650 = vmatprep.subr.bf16.mxu0 %v927_v0  ;;  %690 = vmatprep.subr.bf16.mxu1 %v927_v0 }
  0x70   : > { %651 = vmatpush3.bf16.msra.mxu0 %v789_v10  ;;  %691 = vmatpush3.bf16.msra.mxu1 %v789_v10 }
  0x71   : > { %652 = vmatprep.subr.bf16.mxu0 %v927_v0  ;;  %692 = vmatprep.subr.bf16.mxu1 %v927_v0 }
  0x74   : > { %653 = vmatpush3.bf16.msra.mxu0 %v790_v12  ;;  %693 = vmatpush3.bf16.msra.mxu1 %v790_v12 }
  0x75   : > { %658 = vmatprep.subr.bf16.mxu0 %v927_v0  ;;  %698 = vmatprep.subr.bf16.mxu1 %v927_v0 }
  0x77   : > { %655 = vmatmul.mubr.bf16.vlgmr.msra.gmra.mrb[0].mxu0 %v249_v13 }
  0x78   : > { %659 = vmatpush3.bf16.msra.mxu0 %v1103_v1  ;;  %674 = vmatprep.mubr.msk.bf16.mxu0 %vm928_vm0, %v927_v0 }
  0x79   : > { %660 = vmatprep.subr.bf16.mxu0 %v927_v0 }
  0x7c   : > { %661 = vmatpush3.bf16.msra.mxu0 %v1106_v2 }
  0x7d   : > { %662 = vmatprep.subr.bf16.mxu0 %v927_v0 }
  0x80   : > { %663 = vmatpush3.bf16.msra.mxu0 %v1112_v3 }
  0x81   : > { %664 = vmatprep.subr.bf16.mxu0 %v927_v0 }
  0x84   : > { %665 = vmatpush3.bf16.msra.mxu0 %v1118_v4 }
  0x85   : > { %666 = vmatprep.subr.bf16.mxu0 %v927_v0 }
  0x88   : > { %667 = vmatpush3.bf16.msra.mxu0 %v1124_v5 }
  0x89   : > { %668 = vmatprep.subr.bf16.mxu0 %v927_v0 }
  0x8c   : > { %669 = vmatpush3.bf16.msra.mxu0 %v788_v8 }
  0x8d   : > { %670 = vmatprep.subr.bf16.mxu0 %v927_v0 }
  0x90   : > { %671 = vmatpush3.bf16.msra.mxu0 %v789_v10 }
  0x91   : > { %672 = vmatprep.subr.bf16.mxu0 %v927_v0 }
  0x94   : > { %673 = vmatpush3.bf16.msra.mxu0 %v790_v12 }
  0x97   : > { %675 = vmatmul.mubr.bf16.vlgmr.msra.gmra.mrb[0].mxu0 %v246_v7 }
 0x16a   : > { %v372_v14 = vpop.f32.mrb[0].mxu0 }
 0x16b   : > { %v378_v15 = vsub.f32 %v229_v6, %v372_v14  ;;  %v676_v16 = vpop.f32.mrb[1].mxu0 }
 0x16c   : > { %v375_v17 = vpop.f32.mrb[2].mxu0 }
 0x16d   : > { %v379_v18 = vmul.f32 %v378_v15, %v378_v15  ;;  %v677_v19 = vpop.f32.mrb[3].mxu0 }
 0x16f   : > { %v380_v20 = vpack.c.bf16 %v379_v18, %v379_v18 }
 0x171   : > { %v381_v21 = vunpack.c.l.bf16 %v380_v20 }
 0x173   : > { %v382_v22 = vsub.f32 %v379_v18, %v381_v21 }
 0x175   : > { %v383_v23 = vpack.c.bf16 %v382_v22, %v382_v22 }
 0x177   : > { %695 = vmatmul.mubr.bf16.vlgmr.msra.gmra.mrb[0].mxu1 %v383_v23 }
 0x178   : > { %699 = vmatpush3.bf16.msra.mxu1 %v1103_v1  ;;  %714 = vmatprep.mubr.msk.bf16.mxu1 %vm928_vm0, %v927_v0 }
 0x179   : > { %700 = vmatprep.subr.bf16.mxu1 %v927_v0 }
 0x17c   : > { %701 = vmatpush3.bf16.msra.mxu1 %v1106_v2 }
 0x17d   : > { %702 = vmatprep.subr.bf16.mxu1 %v927_v0 }
 0x180   : > { %703 = vmatpush3.bf16.msra.mxu1 %v1112_v3 }
 0x181   : > { %704 = vmatprep.subr.bf16.mxu1 %v927_v0 }
 0x184   : > { %705 = vmatpush3.bf16.msra.mxu1 %v1118_v4 }
 0x185   : > { %706 = vmatprep.subr.bf16.mxu1 %v927_v0 }
 0x188   : > { %707 = vmatpush3.bf16.msra.mxu1 %v1124_v5 }
 0x189   : > { %708 = vmatprep.subr.bf16.mxu1 %v927_v0 }
 0x18c   : > { %709 = vmatpush3.bf16.msra.mxu1 %v788_v8 }
 0x18d   : > { %710 = vmatprep.subr.bf16.mxu1 %v927_v0 }
 0x190   : > { %711 = vmatpush3.bf16.msra.mxu1 %v789_v10 }
 0x191   : > { %712 = vmatprep.subr.bf16.mxu1 %v927_v0 }
 0x194   : > { %713 = vmatpush3.bf16.msra.mxu1 %v790_v12 }
 0x197   : > { %715 = vmatmul.mubr.bf16.vlgmr.msra.gmra.mrb[4].mxu1 %v380_v20 }
 0x24a   : > { %v418_v24 = vpop.f32.mrb[0].mxu1 }
 0x24b   : > { %v696_v25 = vpop.f32.mrb[1].mxu1 }
 0x24c   : > { %v421_v26 = vpop.f32.mrb[2].mxu1 }
 0x24d   : > { %v697_v27 = vpop.f32.mrb[3].mxu1 }
 0x26a   : > { %v458_v28 = vpop.f32.mrb[4].mxu1 }
 0x26b   : > { %v459_v29 = vadd.f32 %v458_v28, %v418_v24  ;;  %v716_v30 = vpop.f32.mrb[5].mxu1 }
 0x26c   : > { %v461_v31 = vpop.f32.mrb[6].mxu1 }
 0x26d   : > { %v464_v32 = vadd.f32 1e-05, %v459_v29  ;;  %v717_v33 = vpop.f32.mrb[7].mxu1 }
 0x26f   : > { %791 = vrsqrt.f32 %v464_v32 }
 0x279   : > { %v792_v35 = vpop.eup %791 }
 0x27a   : > { %v473_v36 = vmul.f32 %v792_v35, %v596_v34 }
 0x27c   : > { %v474_v38 = vmul.f32 %v473_v36, %v378_v15 }
 0x27e   : > { %v482_v39 = vadd.f32 %v597_v37, %v474_v38 }
 0x280   : > { %483 = vst [vmem:[%s227_s10] sm:$0xff] %v482_v39 }
 0x281   : > { %864 = shalt.err (!%p861_p7)
}
 0x282   : > { %s865_s25 = scalar_lea.hbm %s1179_s5, 128  ;;  %s869_s21 = scalar_lea.hbm %s1226_s4, 512 }
 0x283   : > { %p866_p9 = scmp.ne.s32.totalorder %s1179_s5, %s865_s25  ;;  %p870_p0 = scmp.lt.u32.totalorder %s1179_s5, %s1226_s4 }
 0x284   : > { %p871_p10 = scmp.lt.u32.totalorder %s869_s21, %s865_s25  ;;  %p873_p1 = scmp.lt.u32.totalorder %s865_s25, %s1179_s5 }
 0x285   : > { %p867_p11 = pnand %p866_p9, %p1038_p12 }
 0x286   : > { %p872_p2 = por %p871_p10, %p870_p0 }
 0x287   : > { %p868_p5 = pneg %p867_p11 }
 0x288   : > { %p874_p4 = por %p873_p1, %p872_p2 }
 0x28a   : > { %p875_p6 = pnand %p874_p4, %p868_p5 }
 0x28c   : > { %878 = shalt.err (!%p875_p6)
}
 0x28d   : > { %728 = dma.vmem_to_hbm [thread:$0]  (%p1038_p12), %s1181_s14, 128, %s1179_s5, %s485_s7  }
 0x28e PF: > { %p745_p8 = scmp.ge.s32.totalorder %s921_s18, 2  ;;  %s510_s28 = sand.u32 1, %s909_s15  }
 0x28f   : > { %p1241_p13 = scmp.ne.s32.totalorder %s1231_s22, 0  ;;  %s511_s29 = scalar_lea.sflag [#allocation4], %s510_s28 }
 0x291   : > { %p739_p3 = pnand %p745_p8, %p1241_p13 }
 0x293   : > { %904 = dma.done.wait (!%p739_p3), %s511_s29, 128  }
 0x294   : > { %906 = vsyncadd (!%p739_p3), %s511_s29, 4294967168  ;;  %p18_p7 = scmp.ge.s32.totalorder %s1008_s27, 6   ;;  %s1242_s15 = smov %s913_s16 }
 0x295   : > { %s1243_s16 = smov %s917_s17  ;;  %s1244_s17 = smov %s1034_s24 }
 0x296   : > { %s1245_s18 = smov %s1008_s27  ;;  %20 = sbr.rel (!%p18_p7) target bundleno = 6 (0x6), region = 85 }
 0x29d   :  { %516 = vsyncpa [#allocation3], 1 }
 0x29e   :  { %518 = vsyncpa [#allocation3 + $0x1], 1 }
 0x29f   :  { %519 = vsyncpa [#allocation6], 1 }
 0x2a0   :  { %520 = vsyncpa [#allocation4], 1 }
 0x2a1   :  { %522 = vsyncpa [#allocation4 + $0x1], 1 }

</bundles_post_ra>
